<compile_context>
chip_gen: v7x
topology: tpu7x:2x2x1
jax: 0.10.0
libtpu: 0.0.40
codegen_flags: <defaults>
</compile_context>

<pallas_src>
import functools

import jax
import jax.numpy as jnp
from jax.experimental import pallas as pl

# ---- module config (stride must be 1 and padding = (K-1)//2 so the residual
#      add is shape-consistent — same constraint as the PyTorch module) ----
IN_CHANNELS = 4
OUT_CHANNELS = 8
KERNEL_SIZE = 3
STRIDE = 1          # TODO(synk): stride != 1 breaks the residual add in the
                    # original PyTorch module too; only stride=1 is implemented.
PADDING = (KERNEL_SIZE - 1) // 2
SEQ_LEN = 16
BATCH = 2
NEG_SLOPE = 0.2


def _leaky_relu(x):
    return jnp.where(x > 0, x, NEG_SLOPE * x)


def resblock_kernel(x_ref, wc_ref, bc_ref, w2c_ref, b2c_ref, o_ref, *, seq_len):
    """Fused ResBlock forward — one invocation for the whole batch.

    x_ref  : (Cin, B*L)        input slab, batch folded onto the lane axis
    wc_ref : (K, 2*Cout, Cin)  per-tap conv1 weights; rows Cout: of the center
                               tap hold the 1x1 residual projection (other
                               taps' extra rows are zero)
    bc_ref : (2*Cout, 1)       conv1 bias (rows :Cout) / proj bias (rows Cout:)
    w2c_ref: (K, Cout, Cout)   per-tap conv2 weights
    b2c_ref: (Cout, 1)         conv2 bias
    o_ref  : (Cout, B*L)       output slab (lane-dense single store)
    """
    c_in, n_cols = x_ref.shape
    k_taps, two_c_out, _ = wc_ref.shape
    c_out = two_c_out // 2
    pad = (k_taps - 1) // 2

    x = x_ref[...]

    def shifted(slab, s):
        """Value whose column j equals slab[:, j + s] when the source column
        stays inside the same length-`seq_len` batch segment, else 0 (the
        conv zero-padding halo).  Built from static lane slices + iota mask —
        no VMEM round-trip, no jnp.pad."""
        rows, cols = slab.shape
        if s == 0:
            return slab
        zeros = jnp.zeros((rows, abs(s)), slab.dtype)
        if s > 0:
            moved = jnp.concatenate([slab[:, s:], zeros], axis=1)
        else:
            moved = jnp.concatenate([zeros, slab[:, :cols + s]], axis=1)
        pos = jax.lax.broadcasted_iota(jnp.int32, (rows, cols), 1) % seq_len
        valid = (pos + s >= 0) & (pos + s < seq_len)
        return jnp.where(valid, moved, jnp.zeros_like(moved))

    # conv1 (+ bias) with the 1x1 residual projection riding the center tap:
    # K tiny MXU pushes accumulating in f32 vregs.
    acc1 = jnp.zeros((two_c_out, n_cols), jnp.float32)
    for k in range(k_taps):
        acc1 = acc1 + jnp.dot(wc_ref[k], shifted(x, k - pad),
                              preferred_element_type=jnp.float32)
    acc1 = acc1 + bc_ref[...]
    h = _leaky_relu(acc1[:c_out, :])          # conv1 activations   (Cout, B*L)
    y0 = acc1[c_out:, :]                      # projected residual  (Cout, B*L)

    # conv2 (+ bias): K-tap accumulation on the activated conv1 output.
    acc2 = jnp.zeros((c_out, n_cols), jnp.float32)
    for k in range(k_taps):
        acc2 = acc2 + jnp.dot(w2c_ref[k], shifted(h, k - pad),
                              preferred_element_type=jnp.float32)
    y = acc2 + b2c_ref[...]

    # Single lane-dense output store of the whole slab.
    o_ref[...] = _leaky_relu(y0 + y).astype(o_ref.dtype)


def prepare_params(w1_oik, b1, w2_oik, b2, wp_oik, bp):
    """One-time fold of PyTorch Conv1d params into the fused-kernel layout."""
    c_out, c_in, k_taps = w1_oik.shape
    # Per-tap conv1 weights, with the 1x1 projection stacked under the center
    # tap (zero rows for the other taps): wc[k, co, ci] = w1[co, ci, k].
    wc = jnp.zeros((k_taps, 2 * c_out, c_in), w1_oik.dtype)
    wc = wc.at[:, :c_out, :].set(jnp.transpose(w1_oik, (2, 0, 1)))
    wc = wc.at[PADDING, c_out:, :].set(wp_oik[:, :, 0])
    bc = jnp.concatenate([b1, bp]).reshape(2 * c_out, 1)
    # Per-tap conv2 weights: w2c[k, co, ci] = w2[co, ci, k].
    w2c = jnp.transpose(w2_oik, (2, 0, 1))
    b2c = b2.reshape(c_out, 1)
    return wc, bc, w2c, b2c


@jax.jit
def resblock_forward(x_ncl, wc, bc, w2c, b2c):
    """x_ncl: (B, Cin, L) float32 (PyTorch NCL layout). Returns (B, Cout, L)."""
    B, c_in, L = x_ncl.shape
    k_taps, two_c_out, _ = wc.shape
    c_out = two_c_out // 2

    # Layout plumbing outside the kernel: fold batch onto the lane axis.
    x_slab = jnp.transpose(x_ncl, (1, 0, 2)).reshape(c_in, B * L)

    flops = 2 * B * L * k_taps * (c_in * two_c_out + c_out * c_out)
    bytes_accessed = 4 * (x_slab.size + wc.size + bc.size + w2c.size
                          + b2c.size + c_out * B * L)

    out_slab = pl.pallas_call(
        functools.partial(resblock_kernel, seq_len=L),
        out_shape=jax.ShapeDtypeStruct((c_out, B * L), jnp.float32),
        cost_estimate=pl.CostEstimate(
            flops=flops, transcendentals=0, bytes_accessed=bytes_accessed),
    )(x_slab, wc, bc, w2c, b2c)

    # Restore PyTorch NCL layout in the wrapper.
    return jnp.transpose(out_slab.reshape(c_out, B, L), (1, 0, 2))


def _reference_forward(x_ncl, w1_oik, b1, w2_oik, b2, wp_oik, bp):
    """Pure-JAX reference matching the PyTorch forward (NCL conv layout)."""
    def conv1d(x, w, b, pad):
        y = jax.lax.conv_general_dilated(
            x, w, window_strides=(STRIDE,), padding=[(pad, pad)],
            dimension_numbers=("NCH", "OIH", "NCH"),
            precision=jax.lax.Precision.HIGHEST)
        return y + b[None, :, None]

    y = _leaky_relu(conv1d(x_ncl, w1_oik, b1, PADDING))
    y = conv1d(y, w2_oik, b2, PADDING)
    y0 = conv1d(x_ncl, wp_oik, bp, 0)
    return _leaky_relu(y0 + y)


if __name__ == "__main__":
    assert KERNEL_SIZE % 2 == 1 and PADDING == (KERNEL_SIZE - 1) // 2
    # TODO(synk): only the project_features=True path (in_channels != out_channels)
    # is implemented, matching this configuration of the PyTorch module.
    assert IN_CHANNELS != OUT_CHANNELS

    key = jax.random.PRNGKey(0)
    k_x, k_w1, k_b1, k_w2, k_b2, k_wp, k_bp = jax.random.split(key, 7)

    # input in PyTorch NCL layout
    x = jax.random.normal(k_x, (BATCH, IN_CHANNELS, SEQ_LEN), jnp.float32)

    # deterministic parameters; PyTorch Conv1d weight layout is (Cout, Cin, K)
    w1_oik = jax.random.normal(k_w1, (OUT_CHANNELS, IN_CHANNELS, KERNEL_SIZE),
                               jnp.float32) * 0.1
    b1 = jax.random.normal(k_b1, (OUT_CHANNELS,), jnp.float32) * 0.1
    w2_oik = jax.random.normal(k_w2, (OUT_CHANNELS, OUT_CHANNELS, KERNEL_SIZE),
                               jnp.float32) * 0.1
    b2 = jax.random.normal(k_b2, (OUT_CHANNELS,), jnp.float32) * 0.1
    wp_oik = jax.random.normal(k_wp, (OUT_CHANNELS, IN_CHANNELS, 1),
                               jnp.float32) * 0.1
    bp = jax.random.normal(k_bp, (OUT_CHANNELS,), jnp.float32) * 0.1

    # one-time parameter fold ("module init"), outside the jitted forward
    wc, bc, w2c, b2c = prepare_params(w1_oik, b1, w2_oik, b2, wp_oik, bp)

    out = resblock_forward(x, wc, bc, w2c, b2c)
    out = jax.block_until_ready(out)

    ref = _reference_forward(x, w1_oik, b1, w2_oik, b2, wp_oik, bp)
    assert out.shape == (BATCH, OUT_CHANNELS, SEQ_LEN)
    assert jnp.allclose(out, ref, atol=1e-5, rtol=1e-5), "mismatch vs reference"

    print("KERNEL_OK")
</pallas_src>

<mosaic_0001>
module attributes {stable_mosaic.version = 11 : i64} {
  func.func @resblock_kernel(%arg0: memref<4x32xf32, #tpu.memory_space<vmem>>, %arg1: memref<3x16x4xf32, #tpu.memory_space<vmem>>, %arg2: memref<16x1xf32, #tpu.memory_space<vmem>>, %arg3: memref<3x8x8xf32, #tpu.memory_space<vmem>>, %arg4: memref<8x1xf32, #tpu.memory_space<vmem>>, %arg5: memref<8x32xf32, #tpu.memory_space<vmem>>) attributes {dimension_semantics = [], scalar_prefetch = 0 : i64, scratch_operands = 0 : i64, tpu.core_type = #tpu.core_type<tc>} {
    %c0 = arith.constant 0 : index
    %c0_0 = arith.constant 0 : index
    %0 = vector.load %arg0[%c0, %c0_0] : memref<4x32xf32, #tpu.memory_space<vmem>>, vector<4x32xf32>
    %cst = arith.constant 0.000000e+00 : f32
    %1 = vector.broadcast %cst : f32 to vector<16x32xf32>
    %c0_1 = arith.constant 0 : index
    %c0_2 = arith.constant 0 : index
    %c0_3 = arith.constant 0 : index
    %2 = vector.load %arg1[%c0_1, %c0_2, %c0_3] : memref<3x16x4xf32, #tpu.memory_space<vmem>>, vector<1x16x4xf32>
    %3 = vector.shape_cast %2 : vector<1x16x4xf32> to vector<16x4xf32>
    %cst_4 = arith.constant 0.000000e+00 : f32
    %4 = vector.broadcast %cst_4 : f32 to vector<4x1xf32>
    %5 = vector.extract_strided_slice %0 {offsets = [0, 0], sizes = [4, 31], strides = [1, 1]} : vector<4x32xf32> to vector<4x31xf32>
    %6 = tpu.concatenate %4, %5 in 1 : vector<4x1xf32>, vector<4x31xf32> -> vector<4x32xf32>
    %7 = tpu.iota {dimensions = array<i32: 1>} : vector<4x32xi32>
    %c16_i32 = arith.constant 16 : i32
    %c0_i32 = arith.constant 0 : i32
    %8 = arith.cmpi eq, %c16_i32, %c0_i32 : i32
    %c1_i32 = arith.constant 1 : i32
    %9 = arith.select %8, %c1_i32, %c16_i32 : i32
    %10 = vector.broadcast %9 : i32 to vector<4x32xi32>
    %11 = arith.remsi %7, %10 : vector<4x32xi32>
    %c0_i32_5 = arith.constant 0 : i32
    %12 = vector.broadcast %c0_i32_5 : i32 to vector<4x32xi32>
    %13 = arith.cmpi ne, %11, %12 : vector<4x32xi32>
    %c0_i32_6 = arith.constant 0 : i32
    %14 = vector.broadcast %c0_i32_6 : i32 to vector<4x32xi32>
    %15 = arith.cmpi slt, %11, %14 : vector<4x32xi32>
    %c0_i32_7 = arith.constant 0 : i32
    %16 = arith.cmpi slt, %9, %c0_i32_7 : i32
    %17 = vector.broadcast %16 : i1 to vector<4x32xi1>
    %18 = vector.broadcast %17 : vector<4x32xi1> to vector<4x32xi1>
    %19 = arith.xori %15, %18 : vector<4x32xi1>
    %20 = arith.andi %19, %13 : vector<4x32xi1>
    %21 = vector.broadcast %9 : i32 to vector<4x32xi32>
    %22 = arith.addi %11, %21 : vector<4x32xi32>
    %23 = arith.select %20, %22, %11 : vector<4x32xi1>, vector<4x32xi32>
    %c-1_i32 = arith.constant -1 : i32
    %24 = vector.broadcast %c-1_i32 : i32 to vector<4x32xi32>
    %25 = arith.addi %23, %24 : vector<4x32xi32>
    %c0_i32_8 = arith.constant 0 : i32
    %26 = vector.broadcast %c0_i32_8 : i32 to vector<4x32xi32>
    %27 = arith.cmpi sge, %25, %26 : vector<4x32xi32>
    %c-1_i32_9 = arith.constant -1 : i32
    %28 = vector.broadcast %c-1_i32_9 : i32 to vector<4x32xi32>
    %29 = arith.addi %23, %28 : vector<4x32xi32>
    %c16_i32_10 = arith.constant 16 : i32
    %30 = vector.broadcast %c16_i32_10 : i32 to vector<4x32xi32>
    %31 = arith.cmpi slt, %29, %30 : vector<4x32xi32>
    %32 = arith.andi %27, %31 : vector<4x32xi1>
    %cst_11 = arith.constant 0.000000e+00 : f32
    %33 = vector.broadcast %cst_11 : f32 to vector<4x32xf32>
    %34 = arith.select %32, %6, %33 : vector<4x32xi1>, vector<4x32xf32>
    %cst_12 = arith.constant dense<0.000000e+00> : vector<16x32xf32>
    %35 = tpu.matmul %3, %34, %cst_12 {dimension_numbers = #tpu.dot_dimension_numbers<[1], [0], [0], [1], [0, 0, 1, 1], [], []>} : vector<16x4xf32>, vector<4x32xf32>, vector<16x32xf32> -> vector<16x32xf32>
    %36 = arith.addf %1, %35 : vector<16x32xf32>
    %c1 = arith.constant 1 : index
    %c0_13 = arith.constant 0 : index
    %c0_14 = arith.constant 0 : index
    %37 = vector.load %arg1[%c1, %c0_13, %c0_14] : memref<3x16x4xf32, #tpu.memory_space<vmem>>, vector<1x16x4xf32>
    %38 = vector.shape_cast %37 : vector<1x16x4xf32> to vector<16x4xf32>
    %cst_15 = arith.constant dense<0.000000e+00> : vector<16x32xf32>
    %39 = tpu.matmul %38, %0, %cst_15 {dimension_numbers = #tpu.dot_dimension_numbers<[1], [0], [0], [1], [0, 0, 1, 1], [], []>} : vector<16x4xf32>, vector<4x32xf32>, vector<16x32xf32> -> vector<16x32xf32>
    %40 = arith.addf %36, %39 : vector<16x32xf32>
    %c2 = arith.constant 2 : index
    %c0_16 = arith.constant 0 : index
    %c0_17 = arith.constant 0 : index
    %41 = vector.load %arg1[%c2, %c0_16, %c0_17] : memref<3x16x4xf32, #tpu.memory_space<vmem>>, vector<1x16x4xf32>
    %42 = vector.shape_cast %41 : vector<1x16x4xf32> to vector<16x4xf32>
    %cst_18 = arith.constant 0.000000e+00 : f32
    %43 = vector.broadcast %cst_18 : f32 to vector<4x1xf32>
    %44 = vector.extract_strided_slice %0 {offsets = [0, 1], sizes = [4, 31], strides = [1, 1]} : vector<4x32xf32> to vector<4x31xf32>
    %45 = tpu.concatenate %44, %43 in 1 : vector<4x31xf32>, vector<4x1xf32> -> vector<4x32xf32>
    %46 = tpu.iota {dimensions = array<i32: 1>} : vector<4x32xi32>
    %c16_i32_19 = arith.constant 16 : i32
    %c0_i32_20 = arith.constant 0 : i32
    %47 = arith.cmpi eq, %c16_i32_19, %c0_i32_20 : i32
    %c1_i32_21 = arith.constant 1 : i32
    %48 = arith.select %47, %c1_i32_21, %c16_i32_19 : i32
    %49 = vector.broadcast %48 : i32 to vector<4x32xi32>
    %50 = arith.remsi %46, %49 : vector<4x32xi32>
    %c0_i32_22 = arith.constant 0 : i32
    %51 = vector.broadcast %c0_i32_22 : i32 to vector<4x32xi32>
    %52 = arith.cmpi ne, %50, %51 : vector<4x32xi32>
    %c0_i32_23 = arith.constant 0 : i32
    %53 = vector.broadcast %c0_i32_23 : i32 to vector<4x32xi32>
    %54 = arith.cmpi slt, %50, %53 : vector<4x32xi32>
    %c0_i32_24 = arith.constant 0 : i32
    %55 = arith.cmpi slt, %48, %c0_i32_24 : i32
    %56 = vector.broadcast %55 : i1 to vector<4x32xi1>
    %57 = vector.broadcast %56 : vector<4x32xi1> to vector<4x32xi1>
    %58 = arith.xori %54, %57 : vector<4x32xi1>
    %59 = arith.andi %58, %52 : vector<4x32xi1>
    %60 = vector.broadcast %48 : i32 to vector<4x32xi32>
    %61 = arith.addi %50, %60 : vector<4x32xi32>
    %62 = arith.select %59, %61, %50 : vector<4x32xi1>, vector<4x32xi32>
    %c1_i32_25 = arith.constant 1 : i32
    %63 = vector.broadcast %c1_i32_25 : i32 to vector<4x32xi32>
    %64 = arith.addi %62, %63 : vector<4x32xi32>
    %c0_i32_26 = arith.constant 0 : i32
    %65 = vector.broadcast %c0_i32_26 : i32 to vector<4x32xi32>
    %66 = arith.cmpi sge, %64, %65 : vector<4x32xi32>
    %c1_i32_27 = arith.constant 1 : i32
    %67 = vector.broadcast %c1_i32_27 : i32 to vector<4x32xi32>
    %68 = arith.addi %62, %67 : vector<4x32xi32>
    %c16_i32_28 = arith.constant 16 : i32
    %69 = vector.broadcast %c16_i32_28 : i32 to vector<4x32xi32>
    %70 = arith.cmpi slt, %68, %69 : vector<4x32xi32>
    %71 = arith.andi %66, %70 : vector<4x32xi1>
    %cst_29 = arith.constant 0.000000e+00 : f32
    %72 = vector.broadcast %cst_29 : f32 to vector<4x32xf32>
    %73 = arith.select %71, %45, %72 : vector<4x32xi1>, vector<4x32xf32>
    %cst_30 = arith.constant dense<0.000000e+00> : vector<16x32xf32>
    %74 = tpu.matmul %42, %73, %cst_30 {dimension_numbers = #tpu.dot_dimension_numbers<[1], [0], [0], [1], [0, 0, 1, 1], [], []>} : vector<16x4xf32>, vector<4x32xf32>, vector<16x32xf32> -> vector<16x32xf32>
    %75 = arith.addf %40, %74 : vector<16x32xf32>
    %c0_31 = arith.constant 0 : index
    %c0_32 = arith.constant 0 : index
    %76 = vector.load %arg2[%c0_31, %c0_32] : memref<16x1xf32, #tpu.memory_space<vmem>>, vector<16x1xf32>
    %77 = vector.broadcast %76 : vector<16x1xf32> to vector<16x32xf32>
    %78 = arith.addf %75, %77 : vector<16x32xf32>
    %79 = vector.extract_strided_slice %78 {offsets = [0, 0], sizes = [8, 32], strides = [1, 1]} : vector<16x32xf32> to vector<8x32xf32>
    %cst_33 = arith.constant 0.000000e+00 : f32
    %80 = vector.broadcast %cst_33 : f32 to vector<8x32xf32>
    %81 = arith.cmpf ogt, %79, %80 : vector<8x32xf32>
    %cst_34 = arith.constant 2.000000e-01 : f32
    %82 = vector.broadcast %cst_34 : f32 to vector<8x32xf32>
    %83 = arith.mulf %82, %79 : vector<8x32xf32>
    %84 = arith.select %81, %79, %83 : vector<8x32xi1>, vector<8x32xf32>
    %85 = vector.extract_strided_slice %78 {offsets = [8, 0], sizes = [8, 32], strides = [1, 1]} : vector<16x32xf32> to vector<8x32xf32>
    %cst_35 = arith.constant 0.000000e+00 : f32
    %86 = vector.broadcast %cst_35 : f32 to vector<8x32xf32>
    %c0_36 = arith.constant 0 : index
    %c0_37 = arith.constant 0 : index
    %c0_38 = arith.constant 0 : index
    %87 = vector.load %arg3[%c0_36, %c0_37, %c0_38] : memref<3x8x8xf32, #tpu.memory_space<vmem>>, vector<1x8x8xf32>
    %88 = vector.shape_cast %87 : vector<1x8x8xf32> to vector<8x8xf32>
    %cst_39 = arith.constant 0.000000e+00 : f32
    %89 = vector.broadcast %cst_39 : f32 to vector<8x1xf32>
    %90 = vector.extract_strided_slice %84 {offsets = [0, 0], sizes = [8, 31], strides = [1, 1]} : vector<8x32xf32> to vector<8x31xf32>
    %91 = tpu.concatenate %89, %90 in 1 : vector<8x1xf32>, vector<8x31xf32> -> vector<8x32xf32>
    %92 = tpu.iota {dimensions = array<i32: 1>} : vector<8x32xi32>
    %c16_i32_40 = arith.constant 16 : i32
    %c0_i32_41 = arith.constant 0 : i32
    %93 = arith.cmpi eq, %c16_i32_40, %c0_i32_41 : i32
    %c1_i32_42 = arith.constant 1 : i32
    %94 = arith.select %93, %c1_i32_42, %c16_i32_40 : i32
    %95 = vector.broadcast %94 : i32 to vector<8x32xi32>
    %96 = arith.remsi %92, %95 : vector<8x32xi32>
    %c0_i32_43 = arith.constant 0 : i32
    %97 = vector.broadcast %c0_i32_43 : i32 to vector<8x32xi32>
    %98 = arith.cmpi ne, %96, %97 : vector<8x32xi32>
    %c0_i32_44 = arith.constant 0 : i32
    %99 = vector.broadcast %c0_i32_44 : i32 to vector<8x32xi32>
    %100 = arith.cmpi slt, %96, %99 : vector<8x32xi32>
    %c0_i32_45 = arith.constant 0 : i32
    %101 = arith.cmpi slt, %94, %c0_i32_45 : i32
    %102 = vector.broadcast %101 : i1 to vector<8x32xi1>
    %103 = vector.broadcast %102 : vector<8x32xi1> to vector<8x32xi1>
    %104 = arith.xori %100, %103 : vector<8x32xi1>
    %105 = arith.andi %104, %98 : vector<8x32xi1>
    %106 = vector.broadcast %94 : i32 to vector<8x32xi32>
    %107 = arith.addi %96, %106 : vector<8x32xi32>
    %108 = arith.select %105, %107, %96 : vector<8x32xi1>, vector<8x32xi32>
    %c-1_i32_46 = arith.constant -1 : i32
    %109 = vector.broadcast %c-1_i32_46 : i32 to vector<8x32xi32>
    %110 = arith.addi %108, %109 : vector<8x32xi32>
    %c0_i32_47 = arith.constant 0 : i32
    %111 = vector.broadcast %c0_i32_47 : i32 to vector<8x32xi32>
    %112 = arith.cmpi sge, %110, %111 : vector<8x32xi32>
    %c-1_i32_48 = arith.constant -1 : i32
    %113 = vector.broadcast %c-1_i32_48 : i32 to vector<8x32xi32>
    %114 = arith.addi %108, %113 : vector<8x32xi32>
    %c16_i32_49 = arith.constant 16 : i32
    %115 = vector.broadcast %c16_i32_49 : i32 to vector<8x32xi32>
    %116 = arith.cmpi slt, %114, %115 : vector<8x32xi32>
    %117 = arith.andi %112, %116 : vector<8x32xi1>
    %cst_50 = arith.constant 0.000000e+00 : f32
    %118 = vector.broadcast %cst_50 : f32 to vector<8x32xf32>
    %119 = arith.select %117, %91, %118 : vector<8x32xi1>, vector<8x32xf32>
    %cst_51 = arith.constant dense<0.000000e+00> : vector<8x32xf32>
    %120 = tpu.matmul %88, %119, %cst_51 {dimension_numbers = #tpu.dot_dimension_numbers<[1], [0], [0], [1], [0, 0, 1, 1], [], []>} : vector<8x8xf32>, vector<8x32xf32>, vector<8x32xf32> -> vector<8x32xf32>
    %121 = arith.addf %86, %120 : vector<8x32xf32>
    %c1_52 = arith.constant 1 : index
    %c0_53 = arith.constant 0 : index
    %c0_54 = arith.constant 0 : index
    %122 = vector.load %arg3[%c1_52, %c0_53, %c0_54] : memref<3x8x8xf32, #tpu.memory_space<vmem>>, vector<1x8x8xf32>
    %123 = vector.shape_cast %122 : vector<1x8x8xf32> to vector<8x8xf32>
    %cst_55 = arith.constant dense<0.000000e+00> : vector<8x32xf32>
    %124 = tpu.matmul %123, %84, %cst_55 {dimension_numbers = #tpu.dot_dimension_numbers<[1], [0], [0], [1], [0, 0, 1, 1], [], []>} : vector<8x8xf32>, vector<8x32xf32>, vector<8x32xf32> -> vector<8x32xf32>
    %125 = arith.addf %121, %124 : vector<8x32xf32>
    %c2_56 = arith.constant 2 : index
    %c0_57 = arith.constant 0 : index
    %c0_58 = arith.constant 0 : index
    %126 = vector.load %arg3[%c2_56, %c0_57, %c0_58] : memref<3x8x8xf32, #tpu.memory_space<vmem>>, vector<1x8x8xf32>
    %127 = vector.shape_cast %126 : vector<1x8x8xf32> to vector<8x8xf32>
    %cst_59 = arith.constant 0.000000e+00 : f32
    %128 = vector.broadcast %cst_59 : f32 to vector<8x1xf32>
    %129 = vector.extract_strided_slice %84 {offsets = [0, 1], sizes = [8, 31], strides = [1, 1]} : vector<8x32xf32> to vector<8x31xf32>
    %130 = tpu.concatenate %129, %128 in 1 : vector<8x31xf32>, vector<8x1xf32> -> vector<8x32xf32>
    %131 = tpu.iota {dimensions = array<i32: 1>} : vector<8x32xi32>
    %c16_i32_60 = arith.constant 16 : i32
    %c0_i32_61 = arith.constant 0 : i32
    %132 = arith.cmpi eq, %c16_i32_60, %c0_i32_61 : i32
    %c1_i32_62 = arith.constant 1 : i32
    %133 = arith.select %132, %c1_i32_62, %c16_i32_60 : i32
    %134 = vector.broadcast %133 : i32 to vector<8x32xi32>
    %135 = arith.remsi %131, %134 : vector<8x32xi32>
    %c0_i32_63 = arith.constant 0 : i32
    %136 = vector.broadcast %c0_i32_63 : i32 to vector<8x32xi32>
    %137 = arith.cmpi ne, %135, %136 : vector<8x32xi32>
    %c0_i32_64 = arith.constant 0 : i32
    %138 = vector.broadcast %c0_i32_64 : i32 to vector<8x32xi32>
    %139 = arith.cmpi slt, %135, %138 : vector<8x32xi32>
    %c0_i32_65 = arith.constant 0 : i32
    %140 = arith.cmpi slt, %133, %c0_i32_65 : i32
    %141 = vector.broadcast %140 : i1 to vector<8x32xi1>
    %142 = vector.broadcast %141 : vector<8x32xi1> to vector<8x32xi1>
    %143 = arith.xori %139, %142 : vector<8x32xi1>
    %144 = arith.andi %143, %137 : vector<8x32xi1>
    %145 = vector.broadcast %133 : i32 to vector<8x32xi32>
    %146 = arith.addi %135, %145 : vector<8x32xi32>
    %147 = arith.select %144, %146, %135 : vector<8x32xi1>, vector<8x32xi32>
    %c1_i32_66 = arith.constant 1 : i32
    %148 = vector.broadcast %c1_i32_66 : i32 to vector<8x32xi32>
    %149 = arith.addi %147, %148 : vector<8x32xi32>
    %c0_i32_67 = arith.constant 0 : i32
    %150 = vector.broadcast %c0_i32_67 : i32 to vector<8x32xi32>
    %151 = arith.cmpi sge, %149, %150 : vector<8x32xi32>
    %c1_i32_68 = arith.constant 1 : i32
    %152 = vector.broadcast %c1_i32_68 : i32 to vector<8x32xi32>
    %153 = arith.addi %147, %152 : vector<8x32xi32>
    %c16_i32_69 = arith.constant 16 : i32
    %154 = vector.broadcast %c16_i32_69 : i32 to vector<8x32xi32>
    %155 = arith.cmpi slt, %153, %154 : vector<8x32xi32>
    %156 = arith.andi %151, %155 : vector<8x32xi1>
    %cst_70 = arith.constant 0.000000e+00 : f32
    %157 = vector.broadcast %cst_70 : f32 to vector<8x32xf32>
    %158 = arith.select %156, %130, %157 : vector<8x32xi1>, vector<8x32xf32>
    %cst_71 = arith.constant dense<0.000000e+00> : vector<8x32xf32>
    %159 = tpu.matmul %127, %158, %cst_71 {dimension_numbers = #tpu.dot_dimension_numbers<[1], [0], [0], [1], [0, 0, 1, 1], [], []>} : vector<8x8xf32>, vector<8x32xf32>, vector<8x32xf32> -> vector<8x32xf32>
    %160 = arith.addf %125, %159 : vector<8x32xf32>
    %c0_72 = arith.constant 0 : index
    %c0_73 = arith.constant 0 : index
    %161 = vector.load %arg4[%c0_72, %c0_73] : memref<8x1xf32, #tpu.memory_space<vmem>>, vector<8x1xf32>
    %162 = vector.broadcast %161 : vector<8x1xf32> to vector<8x32xf32>
    %163 = arith.addf %160, %162 : vector<8x32xf32>
    %164 = arith.addf %85, %163 : vector<8x32xf32>
    %cst_74 = arith.constant 0.000000e+00 : f32
    %165 = vector.broadcast %cst_74 : f32 to vector<8x32xf32>
    %166 = arith.cmpf ogt, %164, %165 : vector<8x32xf32>
    %cst_75 = arith.constant 2.000000e-01 : f32
    %167 = vector.broadcast %cst_75 : f32 to vector<8x32xf32>
    %168 = arith.mulf %167, %164 : vector<8x32xf32>
    %169 = arith.select %166, %164, %168 : vector<8x32xi1>, vector<8x32xf32>
    %c0_76 = arith.constant 0 : index
    %c0_77 = arith.constant 0 : index
    %170 = vector.load %arg5[%c0_76, %c0_77] : memref<8x32xf32, #tpu.memory_space<vmem>>, vector<8x32xf32>
    tpu.vector_store %arg5[%c0_76, %c0_77], %169 {strides = array<i32>} : memref<8x32xf32, #tpu.memory_space<vmem>>, vector<8x32xf32>,
    return
  }
}

</mosaic_0001>

<bundles_post_ra>
// kernel: resblock_forward.1
= control target key start
LH: loop header
LB: loop body
LE: loop exit
PB: predicated region body
PF: predicated region fallthrough
CT: control target
= control target key end

     0   :  { %vm58_vm0 = vcmask 1043456   ;;  %vm51_vm1 = vcmask 31744   ;;  %s666_s24 = smov 1   ;;  %v667_v5 = vmov 0   ;;  %s668_s28 = smov 127   ;;  %v29_v6 = vlaneseq  ;;  %s773_s0 = inlined_call_operand.vmem [shape: f32[4,32], index: 0, kind: input, shape index: {}]   ;;  %s774_s1 = inlined_call_operand.vmem [shape: f32[3,16,4], index: 1, kind: input, shape index: {}]   ;;  %s775_s2 = inlined_call_operand.vmem [shape: f32[16,1], index: 2, kind: input, shape index: {}]   ;;  %s776_s3 = inlined_call_operand.vmem [shape: f32[3,8,8], index: 3, kind: input, shape index: {}]   ;;  %s777_s4 = inlined_call_operand.vmem [shape: f32[8,1], index: 4, kind: input, shape index: {}]   ;;  %s778_s5 = inlined_call_operand.vmem [shape: f32[8,32], index: 5, kind: output, shape index: {}]  }
   0x1   :  { %v20_v0 = vld [vmem:[%s773_s0] sm:$0xf]  ;;  %v590_v1 = vld [vmem:[%s774_s1 + $0x10] sm:$0xff]  ;;  %v591_v2 = vld [vmem:[%s774_s1 + $0x18] sm:$0xff]  ;;  %664 = vset.pattern.permute.xlu1 %v667_v5  ;;  %665 = vset.pattern.permute.xlu0 %v667_v5  ;;  %vm27_vm2 = vcmask 7168   ;;  %vm226_vm4 = vcmask 252928  }
   0x2   :  { %24 = vrot.lane.b32.xlu0 %v20_v0, %s666_s24  ;;  %625 = vmatprep.subr.msk.mxu0 %vm58_vm0, %v20_v0  ;;  %v21_v3 = vld [vmem:[%s774_s1] sm:$0xff]  ;;  %v30_v7 = vand.u32 127, %v29_v6  ;;  %v22_v14 = vld [vmem:[%s774_s1 + $0x8] sm:$0xff]  ;;  %v669_v20 = vmov 0.0   ;;  %vm670_vm6 = vmmov 0   ;;  %vm345_vm8 = vcmask 64512  }
   0x3   :  { %626 = vmatpush3.msk.msra.mxu0 %vm58_vm0, %v20_v0  ;;  %627 = vmatprep.mubr.msk.f32.mxu0 %vm51_vm1, %v590_v1  ;;  %v319_v4 = vld [vmem:[%s775_s2] sm:$0xff]  ;;  %v599_v19 = vld [vmem:[%s774_s1 + $0x28] sm:$0xff]  ;;  %v607_v35 = vld [vmem:[%s776_s3 + $0x10] sm:$0xff]  ;;  %vm584_vm9 = vcmask 261120  }
   0x4   :  { %628 = vmatmul.mubr.msk.f32.vlgmr.msra.gmra.mrb[0].mxu0 %vm51_vm1, %v591_v2  ;;  %323 = vperm.xlu1 %664, %v319_v4   ;;  %v35_v8 = vand.u32 15, %v30_v7  ;;  %v598_v15 = vld [vmem:[%s774_s1 + $0x20] sm:$0xff]  ;;  %v603_v27 = vld [vmem:[%s776_s3 + $0x8] sm:$0xff] }
   0x5   :  { %632 = vmatprep.mubr.msk.f32.mxu0 %vm51_vm1, %v21_v3  ;;  %640 = vmatprep.subr.mxu1 %v669_v20  ;;  %v320_v28 = vld [vmem:[%s775_s2 + $0x8] sm:$0xff]  ;;  %v573_v29 = vld [vmem:[%s777_s4] sm:$0xff] }
   0x6   :  { %223 = vrot.lane.b32.xlu0 %v20_v0, %s668_s28  ;;  %v43_v9 = vadd.s32 4294967295, %v35_v8  ;;  %v228_v10 = vadd.s32 1, %v35_v8  ;;  %642 = vmatprep.mubr.msk.f32.mxu1 %vm670_vm6, %v669_v20  ;;  %v336_v32 = vld [vmem:[%s776_s3] sm:$0xff] }
   0x8   :  { %vm44_vm3 = vcmp.ge.s32.totalorder %v43_v9, 0  ;;  %vm230_vm5 = vcmp.lt.s32.totalorder %v228_v10, 16 }
  0x74   :  { %v25_v11 = vpop.permute.xlu0 %24 }
  0x75   :  { %v28_v12 = vsel %vm27_vm2, 0.0, %v25_v11 }
  0x76   :  { %v47_v13 = vsel %vm44_vm3, %v28_v12, 0.0 }
  0x77   :  { %630 = vmatprep.subr.msk.mxu0 %vm58_vm0, %v47_v13 }
  0x78   :  { %631 = vmatpush3.msk.msra.mxu0 %vm58_vm0, %v47_v13  ;;  %v224_v16 = vpop.permute.xlu0 %223 }
  0x79   :  { %633 = vmatmul.mubr.msk.f32.vlgmr.msra.gmra.mrb[0].mxu0 %vm51_vm1, %v22_v14  ;;  %v227_v17 = vsel %vm226_vm4, %v224_v16, 0.0 }
  0x7a   :  { %v232_v18 = vsel %vm230_vm5, %v227_v17, 0.0  ;;  %637 = vmatprep.mubr.msk.f32.mxu0 %vm51_vm1, %v598_v15 }
  0x7b   :  { %635 = vmatprep.subr.msk.mxu0 %vm58_vm0, %v232_v18 }
  0x7c   :  { %636 = vmatpush3.msk.msra.mxu0 %vm58_vm0, %v232_v18 }
  0x81   :  { %638 = vmatmul.mubr.msk.f32.vlgmr.msra.gmra.mrb[0].mxu0 %vm51_vm1, %v599_v19 }
  0x83   :  { %v324_v21 = vpop.permute.xlu1 %323 }
 0x154   :  { %v639_v22 = vpop.f32.mrb[0].mxu0 }
 0x155   :  { %v308_v23 = vpop.f32.mrb[1].mxu0 }
 0x156   :  { %v331_v24 = vadd.f32 %v324_v21, %v308_v23 }
 0x158   :  { %v334_v25 = vmul.f32 0.2, %v331_v24  ;;  %vm333_vm7 = vcmp.gt.f32.partialorder %v331_v24, 0.0 }
 0x15a   :  { %v335_v26 = vsel %vm333_vm7, %v331_v24, %v334_v25 }
 0x15b   :  { %494 = vrot.lane.b32.xlu0 %v335_v26, %s668_s28  ;;  %338 = vrot.lane.b32.xlu1 %v335_v26, %s666_s24 }
 0x15c   :  { %641 = vmatpush3.msra.mxu1 %v335_v26 }
 0x15d   :  { %643 = vmatmul.mubr.msk.f32.vlgmr.msra.gmra.mrb[0].mxu1 %vm345_vm8, %v603_v27  ;;  %645 = vmatprep.subr.mxu1 %v669_v20 }
 0x15e   :  { %647 = vmatprep.mubr.msk.f32.mxu1 %vm670_vm6, %v669_v20 }
 0x15f   :  { %328 = vperm.xlu1 %664, %v320_v28   ;;  %576 = vperm.xlu0 %665, %v573_v29  }
 0x1cd   :  { %v495_v30 = vpop.permute.xlu0 %494  ;;  %v339_v31 = vpop.permute.xlu1 %338 }
 0x1ce   :  { %v341_v33 = vsel %vm27_vm2, 0.0, %v339_v31  ;;  %v497_v34 = vsel %vm226_vm4, %v495_v30, 0.0 }
 0x1cf   :  { %646 = vmatpush3.msk.msra.mxu1 %vm44_vm3, %v341_v33 }
 0x1d0   :  { %648 = vmatmul.mubr.msk.f32.vlgmr.msra.gmra.mrb[2].mxu1 %vm345_vm8, %v336_v32  ;;  %650 = vmatprep.subr.mxu1 %v669_v20 }
 0x1d1   :  { %651 = vmatpush3.msk.msra.mxu1 %vm230_vm5, %v497_v34  ;;  %652 = vmatprep.mubr.msk.f32.mxu1 %vm670_vm6, %v669_v20 }
 0x1d4   :  { %653 = vmatmul.mubr.msk.f32.vlgmr.msra.gmra.mrb[4].mxu1 %vm345_vm8, %v607_v35 }
 0x1de   :  { %v329_v41 = vpop.permute.xlu1 %328  ;;  %v577_v43 = vpop.permute.xlu0 %576 }
 0x1df   :  { %v332_v46 = vadd.f32 %v639_v22, %v329_v41 }
 0x230   :  { %v415_v36 = vpop.f32.mrb[0].mxu1 }
 0x231   :  { %v644_v37 = vpop.f32.mrb[1].mxu1 }
 0x2a3   :  { %v488_v38 = vpop.f32.mrb[2].mxu1 }
 0x2a4   :  { %v489_v39 = vadd.f32 %v488_v38, %v415_v36  ;;  %v649_v40 = vpop.f32.mrb[3].mxu1 }
 0x2a7   :  { %v568_v42 = vpop.f32.mrb[4].mxu1 }
 0x2a8   :  { %v572_v44 = vadd.f32 %v568_v42, %v489_v39  ;;  %v654_v45 = vpop.f32.mrb[5].mxu1 }
 0x2aa   :  { %v579_v47 = vadd.f32 %v577_v43, %v572_v44 }
 0x2ac   :  { %v580_v48 = vadd.f32 %v579_v47, %v332_v46 }
 0x2ae   :  { %vm581_vm10 = vcmp.gt.f32.partialorder %v580_v48, 0.0  ;;  %v582_v49 = vmul.f32 0.2, %v580_v48 }
 0x2b0   :  { %v583_v50 = vsel %vm581_vm10, %v580_v48, %v582_v49 }
 0x2b1   :  { %585 = vst.msk [vmem:[%s778_s5] sm:$0xff] %vm584_vm9, %v583_v50 }

</bundles_post_ra>
